<compile_context>
chip_gen: v5e
topology: v5e:2x2
jax: 0.10.0
libtpu: 0.0.40
codegen_flags: <defaults>
</compile_context>

<pallas_src>
import functools

import jax
import jax.numpy as jnp
from jax.experimental import pallas as pl
from jax.experimental.pallas import tpu as pltpu


def _round_up(x, m):
    return ((x + m - 1) // m) * m


def _ceil_div(a, b):
    return -(-a // b)


def _generator_kernel(x_ref, w1_ref, b1_ref, w2_ref, b2_ref, w3_ref, b3_ref, o_ref):
    # x arrives f32 from HBM; cast to bf16 in-register for the MXU.
    x = x_ref[...].astype(jnp.bfloat16)

    # fc1 (bf16 MXU, f32 accumulate) + bias + LeakyReLU(0.1) in f32
    h = jnp.dot(x, w1_ref[...], preferred_element_type=jnp.float32)
    h = h + b1_ref[...]
    h = jnp.maximum(h, 0.1 * h)          # LeakyReLU(0.1): mul + max
    h = h.astype(jnp.bfloat16)

    # fc2 + bias + LeakyReLU(0.1)
    h = jnp.dot(h, w2_ref[...], preferred_element_type=jnp.float32)
    h = h + b2_ref[...]
    h = jnp.maximum(h, 0.1 * h)
    h = h.astype(jnp.bfloat16)

    # out + bias + tanh (f32 tanh on EUP, cast at the store)
    y = jnp.dot(h, w3_ref[...], preferred_element_type=jnp.float32)
    y = y + b3_ref[...]
    o_ref[...] = jnp.tanh(y).astype(o_ref.dtype)


def prepare_generator_params(params):
    """One-time prep: transpose PyTorch (out, in) weights to (in, out),
    zero-pad the output feature dim to a multiple of 128 (lane-dense store),
    cast MXU operands to bf16, keep biases f32. Do NOT call this inside the
    per-step path."""
    hidden, noise_dim = params["fc1_w"].shape          # nn.Linear: (out, in)
    img_dim = params["out_w"].shape[0]
    img_pad = _round_up(img_dim, 128)

    # Input (K) dim of fc1 is left unpadded: the kernel's K block equals the
    # full array dim, which satisfies the BlockSpec layout rules.
    w1 = params["fc1_w"].T.astype(jnp.bfloat16)                      # (noise, hidden)
    b1 = params["fc1_b"].reshape(1, hidden).astype(jnp.float32)

    w2 = params["fc2_w"].T.astype(jnp.bfloat16)                      # (hidden, hidden)
    b2 = params["fc2_b"].reshape(1, hidden).astype(jnp.float32)

    w3 = jnp.zeros((hidden, img_pad), jnp.bfloat16)
    w3 = w3.at[:, :img_dim].set(params["out_w"].T.astype(jnp.bfloat16))
    b3 = jnp.zeros((1, img_pad), jnp.float32)
    b3 = b3.at[:, :img_dim].set(params["out_b"].reshape(1, -1).astype(jnp.float32))

    return {"w1": w1, "b1": b1, "w2": w2, "b2": b2, "w3": w3, "b3": b3}


def generator_forward(x, prep, img_dim, *, block_batch=1024,
                      out_dtype=jnp.bfloat16, return_padded=False):
    """x: (batch, noise_dim) float32; prep: output of prepare_generator_params.
    Returns (batch, img_dim) in `out_dtype` (bf16 by default), or the padded
    (batch_pad, img_pad) array if return_padded=True (lets the consumer fuse
    the de-padding and avoids an extra HBM pass)."""
    batch, noise_dim = x.shape
    w1, b1, w2, b2, w3, b3 = (prep[k] for k in ("w1", "b1", "w2", "b2", "w3", "b3"))
    assert w1.shape[0] == noise_dim, "noise_dim mismatch vs. prepared params"
    hidden = w1.shape[1]
    img_pad = w3.shape[1]
    out_itemsize = jnp.dtype(out_dtype).itemsize

    # --- adaptive batch tiling -------------------------------------------
    # Balanced tiles bound zero-row padding; >= 2 tiles whenever batch > 16 so
    # both v7x TensorCores get work; tile rounded to 16 for bf16 sublanes.
    n_tiles = max(1, _ceil_div(batch, block_batch))
    if n_tiles == 1 and batch > 16:
        n_tiles = 2
    tb = _round_up(_ceil_div(batch, n_tiles), 16)
    batch_pad = _round_up(batch, tb)
    grid = (batch_pad // tb,)

    # Only pad when needed (skip the extra HBM pass over x otherwise).
    if batch_pad != batch:
        x_in = jnp.pad(x, ((0, batch_pad - batch), (0, 0)))
    else:
        x_in = x

    # --- VMEM budget guard -------------------------------------------------
    # x/out blocks and (constant-index) weights/biases are double-buffered by
    # the default pipeliner.
    vmem_est = (
        2 * tb * noise_dim * 4
        + 2 * tb * img_pad * out_itemsize
        + 2 * (w1.size + w2.size + w3.size) * 2
        + 2 * (b1.size + b2.size + b3.size) * 4
    )
    vmem_limit = max(32 * 1024 * 1024, _round_up(vmem_est + (4 << 20), 1 << 20))
    if vmem_limit > 48 * 1024 * 1024:
        # TODO(synk): fall back to a tiled hidden/img grid axis for very large
        # hidden/img_dim instead of fully-resident weights (v7x has 64 MiB VMEM).
        raise ValueError(
            f"resident-weight VMEM estimate {vmem_est} bytes exceeds budget; "
            f"reduce block_batch or tile the feature dims")

    resident = lambda i: (0, 0)   # weights/biases: same block every grid step
    in_specs = [
        pl.BlockSpec((tb, noise_dim), lambda i: (i, 0)),
        pl.BlockSpec((noise_dim, hidden), resident),
        pl.BlockSpec((1, hidden), resident),
        pl.BlockSpec((hidden, hidden), resident),
        pl.BlockSpec((1, hidden), resident),
        pl.BlockSpec((hidden, img_pad), resident),
        pl.BlockSpec((1, img_pad), resident),
    ]
    out_spec = pl.BlockSpec((tb, img_pad), lambda i: (i, 0))

    flops = 2 * batch_pad * (noise_dim * hidden + hidden * hidden + hidden * img_pad)
    bytes_accessed = (
        x_in.size * 4                              # f32 input
        + batch_pad * img_pad * out_itemsize       # bf16 output
        + (w1.size + w2.size + w3.size) * 2
        + (b1.size + b2.size + b3.size) * 4
    )
    cost = pl.CostEstimate(
        flops=flops,
        transcendentals=batch_pad * img_pad,       # tanh
        bytes_accessed=bytes_accessed,
    )

    out_p = pl.pallas_call(
        _generator_kernel,
        out_shape=jax.ShapeDtypeStruct((batch_pad, img_pad), out_dtype),
        grid=grid,
        in_specs=in_specs,
        out_specs=out_spec,
        compiler_params=pltpu.CompilerParams(
            dimension_semantics=("parallel",),      # megacore-shard batch axis
            vmem_limit_bytes=vmem_limit,
        ),
        cost_estimate=cost,
    )(x_in, w1, b1, w2, b2, w3, b3)

    if return_padded or (batch_pad == batch and img_pad == img_dim):
        return out_p
    return out_p[:batch, :img_dim]


def init_params(key, noise_dim, img_dim, hidden=256):
    """Deterministic synthetic init matching nn.Linear shapes/convention."""
    ks = jax.random.split(key, 6)

    def lin(kw, kb, fan_in, fan_out):
        bound = 1.0 / jnp.sqrt(fan_in)
        w = jax.random.uniform(kw, (fan_out, fan_in), jnp.float32, -bound, bound)
        b = jax.random.uniform(kb, (fan_out,), jnp.float32, -bound, bound)
        return w, b

    fc1_w, fc1_b = lin(ks[0], ks[1], noise_dim, hidden)
    fc2_w, fc2_b = lin(ks[2], ks[3], hidden, hidden)
    out_w, out_b = lin(ks[4], ks[5], hidden, img_dim)
    return {
        "fc1_w": fc1_w, "fc1_b": fc1_b,
        "fc2_w": fc2_w, "fc2_b": fc2_b,
        "out_w": out_w, "out_b": out_b,
    }


def _reference_forward(x, params):
    h = x @ params["fc1_w"].T + params["fc1_b"]
    h = jnp.where(h > 0, h, 0.1 * h)
    h = h @ params["fc2_w"].T + params["fc2_b"]
    h = jnp.where(h > 0, h, 0.1 * h)
    y = h @ params["out_w"].T + params["out_b"]
    return jnp.tanh(y)


if __name__ == "__main__":
    key = jax.random.PRNGKey(0)
    k_x, k_x2, k_p = jax.random.split(key, 3)

    noise_dim, img_dim = 64, 200
    params = init_params(k_p, noise_dim, img_dim)
    prep = prepare_generator_params(params)          # one-time weight prep

    # Case 1: small, non-aligned batch (exercises batch padding + slice path).
    batch = 10
    x = jax.random.normal(k_x, (batch, noise_dim), jnp.float32)
    out = jax.block_until_ready(generator_forward(x, prep, img_dim))
    ref = _reference_forward(x, params)
    assert out.shape == (batch, img_dim)
    err = float(jnp.max(jnp.abs(out.astype(jnp.float32) - ref)))
    # bf16 MXU operands + bf16 output with f32 accumulation -> loose tolerance.
    assert err < 5e-2, f"mismatch vs reference (case 1): max abs err {err}"

    # Case 2: batch > 16 (exercises the >=2-tile / adaptive-tb path).
    batch2 = 100
    x2 = jax.random.normal(k_x2, (batch2, noise_dim), jnp.float32)
    out2 = jax.block_until_ready(generator_forward(x2, prep, img_dim))
    ref2 = _reference_forward(x2, params)
    assert out2.shape == (batch2, img_dim)
    err2 = float(jnp.max(jnp.abs(out2.astype(jnp.float32) - ref2)))
    assert err2 < 5e-2, f"mismatch vs reference (case 2): max abs err {err2}"

    print("KERNEL_OK")
</pallas_src>

<mosaic_0001>
module attributes {stable_mosaic.version = 11 : i64} {
  func.func @_generator_kernel(%arg0: i32, %arg1: memref<16x64xf32, #tpu.memory_space<vmem>>, %arg2: memref<64x256xbf16, #tpu.memory_space<vmem>>, %arg3: memref<1x256xf32, #tpu.memory_space<vmem>>, %arg4: memref<256x256xbf16, #tpu.memory_space<vmem>>, %arg5: memref<1x256xf32, #tpu.memory_space<vmem>>, %arg6: memref<256x256xbf16, #tpu.memory_space<vmem>>, %arg7: memref<1x256xf32, #tpu.memory_space<vmem>>, %arg8: memref<16x256xbf16, #tpu.memory_space<vmem>>) attributes {dimension_semantics = [#tpu.dimension_semantics<parallel>], iteration_bounds = array<i64: 1>, scalar_prefetch = 0 : i64, scratch_operands = 0 : i64, tpu.core_type = #tpu.core_type<tc>, window_params = [{transform_indices = @transform_0, window_bounds = array<i64: 16, 64>}, {pipeline_mode = #tpu.pipeline_mode<synchronous>, transform_indices = @transform_1, window_bounds = array<i64: 64, 256>}, {pipeline_mode = #tpu.pipeline_mode<synchronous>, transform_indices = @transform_2, window_bounds = array<i64: 1, 256>}, {pipeline_mode = #tpu.pipeline_mode<synchronous>, transform_indices = @transform_3, window_bounds = array<i64: 256, 256>}, {pipeline_mode = #tpu.pipeline_mode<synchronous>, transform_indices = @transform_4, window_bounds = array<i64: 1, 256>}, {pipeline_mode = #tpu.pipeline_mode<synchronous>, transform_indices = @transform_5, window_bounds = array<i64: 256, 256>}, {pipeline_mode = #tpu.pipeline_mode<synchronous>, transform_indices = @transform_6, window_bounds = array<i64: 1, 256>}, {transform_indices = @transform_7, window_bounds = array<i64: 16, 256>}]} {
    %c0 = arith.constant 0 : index
    %c0_0 = arith.constant 0 : index
    %0 = vector.load %arg1[%c0, %c0_0] : memref<16x64xf32, #tpu.memory_space<vmem>>, vector<16x64xf32>
    %1 = arith.truncf %0 : vector<16x64xf32> to vector<16x64xbf16>
    %c0_1 = arith.constant 0 : index
    %c0_2 = arith.constant 0 : index
    %2 = vector.load %arg2[%c0_1, %c0_2] : memref<64x256xbf16, #tpu.memory_space<vmem>>, vector<64x256xbf16>
    %cst = arith.constant dense<0.000000e+00> : vector<16x256xf32>
    %3 = tpu.matmul %1, %2, %cst {dimension_numbers = #tpu.dot_dimension_numbers<[1], [0], [0], [1], [0, 0, 1, 1], [], []>} : vector<16x64xbf16>, vector<64x256xbf16>, vector<16x256xf32> -> vector<16x256xf32>
    %c0_3 = arith.constant 0 : index
    %c0_4 = arith.constant 0 : index
    %4 = vector.load %arg3[%c0_3, %c0_4] : memref<1x256xf32, #tpu.memory_space<vmem>>, vector<1x256xf32>
    %5 = vector.broadcast %4 : vector<1x256xf32> to vector<16x256xf32>
    %6 = arith.addf %3, %5 : vector<16x256xf32>
    %cst_5 = arith.constant 1.000000e-01 : f32
    %7 = vector.broadcast %cst_5 : f32 to vector<16x256xf32>
    %8 = arith.mulf %7, %6 : vector<16x256xf32>
    %9 = arith.maximumf %6, %8 : vector<16x256xf32>
    %10 = arith.truncf %9 : vector<16x256xf32> to vector<16x256xbf16>
    %c0_6 = arith.constant 0 : index
    %c0_7 = arith.constant 0 : index
    %11 = vector.load %arg4[%c0_6, %c0_7] : memref<256x256xbf16, #tpu.memory_space<vmem>>, vector<256x256xbf16>
    %cst_8 = arith.constant dense<0.000000e+00> : vector<16x256xf32>
    %12 = tpu.matmul %10, %11, %cst_8 {dimension_numbers = #tpu.dot_dimension_numbers<[1], [0], [0], [1], [0, 0, 1, 1], [], []>} : vector<16x256xbf16>, vector<256x256xbf16>, vector<16x256xf32> -> vector<16x256xf32>
    %c0_9 = arith.constant 0 : index
    %c0_10 = arith.constant 0 : index
    %13 = vector.load %arg5[%c0_9, %c0_10] : memref<1x256xf32, #tpu.memory_space<vmem>>, vector<1x256xf32>
    %14 = vector.broadcast %13 : vector<1x256xf32> to vector<16x256xf32>
    %15 = arith.addf %12, %14 : vector<16x256xf32>
    %cst_11 = arith.constant 1.000000e-01 : f32
    %16 = vector.broadcast %cst_11 : f32 to vector<16x256xf32>
    %17 = arith.mulf %16, %15 : vector<16x256xf32>
    %18 = arith.maximumf %15, %17 : vector<16x256xf32>
    %19 = arith.truncf %18 : vector<16x256xf32> to vector<16x256xbf16>
    %c0_12 = arith.constant 0 : index
    %c0_13 = arith.constant 0 : index
    %20 = vector.load %arg6[%c0_12, %c0_13] : memref<256x256xbf16, #tpu.memory_space<vmem>>, vector<256x256xbf16>
    %cst_14 = arith.constant dense<0.000000e+00> : vector<16x256xf32>
    %21 = tpu.matmul %19, %20, %cst_14 {dimension_numbers = #tpu.dot_dimension_numbers<[1], [0], [0], [1], [0, 0, 1, 1], [], []>} : vector<16x256xbf16>, vector<256x256xbf16>, vector<16x256xf32> -> vector<16x256xf32>
    %c0_15 = arith.constant 0 : index
    %c0_16 = arith.constant 0 : index
    %22 = vector.load %arg7[%c0_15, %c0_16] : memref<1x256xf32, #tpu.memory_space<vmem>>, vector<1x256xf32>
    %23 = vector.broadcast %22 : vector<1x256xf32> to vector<16x256xf32>
    %24 = arith.addf %21, %23 : vector<16x256xf32>
    %25 = math.tanh %24 : vector<16x256xf32>
    %26 = arith.truncf %25 : vector<16x256xf32> to vector<16x256xbf16>
    %c0_17 = arith.constant 0 : index
    %c0_18 = arith.constant 0 : index
    %27 = vector.load %arg8[%c0_17, %c0_18] : memref<16x256xbf16, #tpu.memory_space<vmem>>, vector<16x256xbf16>
    tpu.vector_store %arg8[%c0_17, %c0_18], %26 {strides = array<i32>} : memref<16x256xbf16, #tpu.memory_space<vmem>>, vector<16x256xbf16>,
    return
  }
  func.func @transform_0(%arg0: i32) -> (i32, i32) {
    %c0_i32 = arith.constant 0 : i32
    %c0_i32_0 = arith.constant 0 : i32
    return %arg0, %c0_i32 : i32, i32
  }
  func.func @transform_1(%arg0: i32) -> (i32, i32) {
    %c0_i32 = arith.constant 0 : i32
    %c0_i32_0 = arith.constant 0 : i32
    %c0_i32_1 = arith.constant 0 : i32
    return %c0_i32, %c0_i32_0 : i32, i32
  }
  func.func @transform_2(%arg0: i32) -> (i32, i32) {
    %c0_i32 = arith.constant 0 : i32
    %c0_i32_0 = arith.constant 0 : i32
    %c0_i32_1 = arith.constant 0 : i32
    return %c0_i32, %c0_i32_0 : i32, i32
  }
  func.func @transform_3(%arg0: i32) -> (i32, i32) {
    %c0_i32 = arith.constant 0 : i32
    %c0_i32_0 = arith.constant 0 : i32
    %c0_i32_1 = arith.constant 0 : i32
    return %c0_i32, %c0_i32_0 : i32, i32
  }
  func.func @transform_4(%arg0: i32) -> (i32, i32) {
    %c0_i32 = arith.constant 0 : i32
    %c0_i32_0 = arith.constant 0 : i32
    %c0_i32_1 = arith.constant 0 : i32
    return %c0_i32, %c0_i32_0 : i32, i32
  }
  func.func @transform_5(%arg0: i32) -> (i32, i32) {
    %c0_i32 = arith.constant 0 : i32
    %c0_i32_0 = arith.constant 0 : i32
    %c0_i32_1 = arith.constant 0 : i32
    return %c0_i32, %c0_i32_0 : i32, i32
  }
  func.func @transform_6(%arg0: i32) -> (i32, i32) {
    %c0_i32 = arith.constant 0 : i32
    %c0_i32_0 = arith.constant 0 : i32
    %c0_i32_1 = arith.constant 0 : i32
    return %c0_i32, %c0_i32_0 : i32, i32
  }
  func.func @transform_7(%arg0: i32) -> (i32, i32) {
    %c0_i32 = arith.constant 0 : i32
    %c0_i32_0 = arith.constant 0 : i32
    return %arg0, %c0_i32 : i32, i32
  }
}

</mosaic_0001>

<bundles_post_ra>
// kernel: tpu_custom_call.1
= control target key start
LH: loop header
LB: loop body
LE: loop exit
PB: predicated region body
PF: predicated region fallthrough
CT: control target
= control target key end

     0   :  { %12 = vsyncpa [#allocation3], 0  ;;  %s1369_s0 = inlined_call_operand.hbm [shape: f32[16,64], index: 0, kind: input, shape index: {}]   ;;  %s1370_s1 = inlined_call_operand.hbm [shape: bf16[64,256], index: 1, kind: input, shape index: {}]   ;;  %s1371_s2 = inlined_call_operand.hbm [shape: f32[1,256], index: 2, kind: input, shape index: {}]   ;;  %s1372_s3 = inlined_call_operand.hbm [shape: bf16[256,256], index: 3, kind: input, shape index: {}]   ;;  %s1373_s4 = inlined_call_operand.vmem [shape: f32[1,256], index: 4, kind: input, shape index: {}]   ;;  %s1374_s5 = inlined_call_operand.hbm [shape: bf16[256,256], index: 5, kind: input, shape index: {}]   ;;  %s1375_s6 = inlined_call_operand.vmem [shape: f32[1,256], index: 6, kind: input, shape index: {}]   ;;  %s1376_s7 = inlined_call_operand.hbm [shape: bf16[16,256], index: 7, kind: output, shape index: {}]  }
   0x1   :  { %13 = vsyncpa [#allocation6], 0 }
   0x2   :  { %14 = vsyncpa [#allocation9], 0 }
   0x3   :  { %15 = vsyncpa [#allocation4], 0  ;;  %s33_s26 = sshll.u32 %s1370_s1, 4  ;;  %s1280_s27 = smov [#allocation5]   ;;  %s34_s26 = int_to_ptr.hbm [resolvable:$true] %s33_s26 }
   0x4   :  { %s35_s28 = sshll.u32 %s1280_s27, 4  ;;  %s57_s8 = sshll.u32 %s1372_s3, 4  ;;  %s36_s28 = int_to_ptr.vmem [resolvable:$true] %s35_s28  ;;  %s58_s8 = int_to_ptr.hbm [resolvable:$true] %s57_s8 }
   0x5   :  { %s1281_s9 = smov 128   ;;  %s1282_s10 = smov 8  }
   0x6   :  { %41 = dma.hbm_to_vmem [thread:$0]  %s34_s26, 1024, %s36_s28, [#allocation6], %s1281_s9, %s1281_s9, %s1282_s10  }
   0x7   :  { %s1283_s11 = smov [#allocation8]   ;;  %s20_s1 = sshll.u32 %s1369_s0, 4  ;;  %s21_s1 = int_to_ptr.hbm [resolvable:$true] %s20_s1 }
   0x8   :  { %s59_s12 = sshll.u32 %s1283_s11, 4  ;;  %s47_s16 = sshll.u32 %s1371_s2, 4  ;;  %s60_s12 = int_to_ptr.vmem [resolvable:$true] %s59_s12  ;;  %s48_s16 = int_to_ptr.hbm [resolvable:$true] %s47_s16 }
   0x9   :  { %65 = dma.hbm_to_vmem [thread:$0]  %s58_s8, 4096, %s60_s12, [#allocation9], %s1281_s9, %s1281_s9, %s1282_s10  }
   0xa   :  { %s1284_s17 = smov [#allocation2]   ;;  %s1285_s19 = smov [#allocation7]  }
   0xb   :  { %s22_s18 = sshll.u32 %s1284_s17, 4  ;;  %s49_s0 = sshll.u32 %s1285_s19, 4  ;;  %s23_s18 = int_to_ptr.vmem [resolvable:$true] %s22_s18  ;;  %s50_s0 = int_to_ptr.vmem [resolvable:$true] %s49_s0 }
   0xc   :  { %28 = dma.hbm_to_vmem [thread:$0]  %s21_s1, 256, %s23_s18, [#allocation3], %s1281_s9, %s1281_s9, %s1282_s10  }
   0xd   :  { %s72_s22 = sshll.u32 %s1374_s5, 4  ;;  %s1286_s23 = smov [#allocation10]   ;;  %s73_s22 = int_to_ptr.hbm [resolvable:$true] %s72_s22 }
   0xe   :  { %52 = dma.hbm_to_vmem [thread:$0]  %s48_s16, 32, %s50_s0, [#allocation6]  }
   0xf   :  { %s74_s24 = sshll.u32 %s1286_s23, 4  ;;  %s75_s24 = int_to_ptr.vmem [resolvable:$true] %s74_s24 }
  0x10   :  { %80 = dma.hbm_to_vmem [thread:$0]  %s73_s22, 4096, %s75_s24, [#allocation9], %s1281_s9, %s1281_s9, %s1282_s10  }
  0x11   :  { %1272 = dma.done.wait [#allocation3], 256  }
  0x12   :  { %1273 = vsyncadd [#allocation3], 4294967040 }
  0x13   :  { %1274 = dma.done.wait [#allocation6], 1056  }
  0x14   :  { %1275 = vsyncadd [#allocation6], 4294966240 }
  0x15   :  { %1276 = dma.done.wait [#allocation9], 8192  }
  0x16   :  { %1277 = vsyncadd [#allocation9], 4294959104  ;;  %v776_v0 = vld [vmem:[#allocation5 + $0x30] sm:$0xf]  ;;  %v1047_v1 = vld [vmem:[#allocation5 + $0x34] sm:$0xf0] }
  0x17   :  { %v1046_v2 = vld [vmem:[#allocation5 + $0x34] sm:$0xf]  ;;  %v777_v3 = vor.u32 %v1047_v1, %v776_v0  ;;  %v778_v4 = vld [vmem:[#allocation5 + $0x38] sm:$0xf0]  ;;  %v768_v5 = vld [vmem:[#allocation5 + $0x20] sm:$0xf] }
  0x18   :  { %v1045_v6 = vld [vmem:[#allocation5 + $0x24] sm:$0xf0]  ;;  %v781_v7 = vor.u32 %v1046_v2, %v778_v4  ;;  %v1044_v8 = vld [vmem:[#allocation5 + $0x24] sm:$0xf]  ;;  %v770_v9 = vld [vmem:[#allocation5 + $0x28] sm:$0xf0] }
  0x19   :  { %169 = vmatpush.bf16.msra.mxu0 %v777_v3  ;;  %v769_v10 = vor.u32 %v1045_v6, %v768_v5  ;;  %v773_v11 = vor.u32 %v1044_v8, %v770_v9  ;;  %v760_v12 = vld [vmem:[#allocation5 + $0x10] sm:$0xf]  ;;  %v1043_v13 = vld [vmem:[#allocation5 + $0x14] sm:$0xf0]  ;;  %v1042_v14 = vld [vmem:[#allocation5 + $0x14] sm:$0xf] }
  0x1a   :  { %183 = vmatpush.bf16.msra.mxu1 %v781_v7  ;;  %v762_v15 = vld [vmem:[#allocation5 + $0x18] sm:$0xf0]  ;;  %v752_v16 = vld [vmem:[#allocation5] sm:$0xf]  ;;  %v1041_v17 = vld [vmem:[#allocation5 + $0x4] sm:$0xf0]  ;;  %v761_v21 = vor.u32 %v1043_v13, %v760_v12 }
  0x1b   :  { %v842_v18 = vld [vmem:[#allocation8 + $0x70] sm:$0xf]  ;;  %v1063_v19 = vld [vmem:[#allocation8 + $0x74] sm:$0xf0]  ;;  %v1040_v22 = vld [vmem:[#allocation5 + $0x4] sm:$0xf]  ;;  %v765_v26 = vor.u32 %v1042_v14, %v762_v15  ;;  %v753_v39 = vor.u32 %v1041_v17, %v752_v16 }
  0x1c   :  { %v906_v20 = vld [vmem:[#allocation8 + $0xf0] sm:$0xf]  ;;  %v754_v23 = vld [vmem:[#allocation5 + $0x8] sm:$0xf0]  ;;  %v843_v24 = vor.u32 %v1063_v19, %v842_v18  ;;  %v1079_v25 = vld [vmem:[#allocation8 + $0xf4] sm:$0xf0] }
  0x1d   :  { %170 = vmatpush.bf16.msra.mxu0 %v769_v10  ;;  %v907_v27 = vor.u32 %v1079_v25, %v906_v20  ;;  %v1062_v28 = vld [vmem:[#allocation8 + $0x74] sm:$0xf]  ;;  %v844_v29 = vld [vmem:[#allocation8 + $0x78] sm:$0xf0]  ;;  %v834_v30 = vld [vmem:[#allocation8 + $0x60] sm:$0xf]  ;;  %v757_v43 = vor.u32 %v1040_v22, %v754_v23 }
  0x1e   :  { %184 = vmatpush.bf16.msra.mxu1 %v773_v11  ;;  %401 = vmatpush.bf16.msra.mxu2 %v843_v24  ;;  %v1061_v31 = vld [vmem:[#allocation8 + $0x64] sm:$0xf0]  ;;  %v898_v32 = vld [vmem:[#allocation8 + $0xe0] sm:$0xf]  ;;  %v104_v34 = vld [vmem:[#allocation2] sm:$0xff]  ;;  %v847_v44 = vor.u32 %v1062_v28, %v844_v29  ;;  %vm161_vm0 = vcmask 523264  }
  0x1f   :  { %v1077_v33 = vld [vmem:[#allocation8 + $0xe4] sm:$0xf0]  ;;  %415 = vmatpush.bf16.msra.mxu3 %v907_v27  ;;  %v1078_v35 = vld [vmem:[#allocation8 + $0xf4] sm:$0xf]  ;;  %v908_v36 = vld [vmem:[#allocation8 + $0xf8] sm:$0xf0]  ;;  %v835_v37 = vor.u32 %v1061_v31, %v834_v30 }
  0x20   :  { %v899_v38 = vor.u32 %v1077_v33, %v898_v32  ;;  %v105_v40 = vld [vmem:[#allocation2 + $0x8] sm:$0xff]  ;;  %v826_v41 = vld [vmem:[#allocation8 + $0x50] sm:$0xf]  ;;  %v911_v47 = vor.u32 %v1078_v35, %v908_v36  ;;  %v1060_v48 = vld [vmem:[#allocation8 + $0x64] sm:$0xf]  ;;  %s735_s29 = sshll.u32 %s1376_s7, 4  ;;  %s736_s29 = int_to_ptr.hbm [resolvable:$true] %s735_s29 }
  0x21   :  { %171 = vmatpush.bf16.msra.mxu0 %v761_v21  ;;  %v1059_v42 = vld [vmem:[#allocation8 + $0x54] sm:$0xf0]  ;;  %v890_v45 = vld [vmem:[#allocation8 + $0xd0] sm:$0xf]  ;;  %v836_v49 = vld [vmem:[#allocation8 + $0x68] sm:$0xf0]  ;;  %v106_v52 = vpack.c.bf16 %v105_v40, %v104_v34 }
  0x22   :  { %185 = vmatpush.bf16.msra.mxu1 %v765_v26  ;;  %v1075_v46 = vld [vmem:[#allocation8 + $0xd4] sm:$0xf0]  ;;  %402 = vmatpush.bf16.msra.mxu2 %v835_v37  ;;  %v1076_v50 = vld [vmem:[#allocation8 + $0xe4] sm:$0xf]  ;;  %v827_v51 = vor.u32 %v1059_v42, %v826_v41  ;;  %v900_v53 = vld [vmem:[#allocation8 + $0xe8] sm:$0xf0]  ;;  %v839_v59 = vor.u32 %v1060_v48, %v836_v49 }
  0x23   :  { %416 = vmatpush.bf16.msra.mxu3 %v899_v38  ;;  %v891_v54 = vor.u32 %v1075_v46, %v890_v45  ;;  %v818_v55 = vld [vmem:[#allocation8 + $0x40] sm:$0xf]  ;;  %v1057_v56 = vld [vmem:[#allocation8 + $0x44] sm:$0xf0]  ;;  %v903_v60 = vor.u32 %v1076_v50, %v900_v53  ;;  %v1058_v61 = vld [vmem:[#allocation8 + $0x54] sm:$0xf] }
  0x24   :  { %v882_v57 = vld [vmem:[#allocation8 + $0xc0] sm:$0xf]  ;;  %v1073_v58 = vld [vmem:[#allocation8 + $0xc4] sm:$0xf0]  ;;  %v828_v62 = vld [vmem:[#allocation8 + $0x58] sm:$0xf0]  ;;  %v819_v63 = vor.u32 %v1057_v56, %v818_v55 }
  0x25   :  { %172 = vmatpush.bf16.msra.mxu0 %v753_v39  ;;  %v1074_v0 = vld [vmem:[#allocation8 + $0xd4] sm:$0xf]  ;;  %v892_v1 = vld [vmem:[#allocation8 + $0xd8] sm:$0xf0]  ;;  %v883_v2 = vor.u32 %v1073_v58, %v882_v57  ;;  %v831_v3 = vor.u32 %v1058_v61, %v828_v62  ;;  %v1056_v5 = vld [vmem:[#allocation8 + $0x44] sm:$0xf] }
  0x26   :  { %186 = vmatpush.bf16.msra.mxu1 %v757_v43  ;;  %403 = vmatpush.bf16.msra.mxu2 %v827_v51  ;;  %v895_v4 = vor.u32 %v1074_v0, %v892_v1  ;;  %v820_v6 = vld [vmem:[#allocation8 + $0x48] sm:$0xf0]  ;;  %v1072_v7 = vld [vmem:[#allocation8 + $0xc4] sm:$0xf]  ;;  %v810_v11 = vld [vmem:[#allocation8 + $0x30] sm:$0xf] }
  0x27   :  { %417 = vmatpush.bf16.msra.mxu3 %v891_v54  ;;  %v884_v8 = vld [vmem:[#allocation8 + $0xc8] sm:$0xf0]  ;;  %v823_v9 = vor.u32 %v1056_v5, %v820_v6  ;;  %v1055_v12 = vld [vmem:[#allocation8 + $0x34] sm:$0xf0]  ;;  %v874_v14 = vld [vmem:[#allocation8 + $0xb0] sm:$0xf] }
  0x28   :  { %782 = vmatmul.msk.bf16.vlgmr.msra.gmra.mxu0 %vm161_vm0, %v106_v52  ;;  %v887_v10 = vor.u32 %v1072_v7, %v884_v8  ;;  %v811_v13 = vor.u32 %v1055_v12, %v810_v11  ;;  %v1071_v15 = vld [vmem:[#allocation8 + $0xb4] sm:$0xf0]  ;;  %v1054_v16 = vld [vmem:[#allocation8 + $0x34] sm:$0xf]  ;;  %v812_v18 = vld [vmem:[#allocation8 + $0x38] sm:$0xf0] }
  0x29   :  { %429 = vmatpush.bf16.msrb.mxu0 %v847_v44  ;;  %783 = vmatmul.msk.bf16.vlgmr.msra.gmra.mxu1 %vm161_vm0, %v106_v52  ;;  %v875_v17 = vor.u32 %v1071_v15, %v874_v14  ;;  %v1070_v19 = vld [vmem:[#allocation8 + $0xb4] sm:$0xf]  ;;  %v876_v20 = vld [vmem:[#allocation8 + $0xb8] sm:$0xf0]  ;;  %v815_v21 = vor.u32 %v1054_v16, %v812_v18  ;;  %v802_v23 = vld [vmem:[#allocation8 + $0x20] sm:$0xf] }
  0x2a   :  { %443 = vmatpush.bf16.msrb.mxu1 %v911_v47  ;;  %404 = vmatpush.bf16.msra.mxu2 %v819_v63  ;;  %v879_v22 = vor.u32 %v1070_v19, %v876_v20  ;;  %v1053_v24 = vld [vmem:[#allocation8 + $0x24] sm:$0xf0]  ;;  %v866_v25 = vld [vmem:[#allocation8 + $0xa0] sm:$0xf]  ;;  %v1052_v28 = vld [vmem:[#allocation8 + $0x24] sm:$0xf] }
  0x2b   :  { %418 = vmatpush.bf16.msra.mxu3 %v883_v2  ;;  %v803_v26 = vor.u32 %v1053_v24, %v802_v23  ;;  %v1069_v27 = vld [vmem:[#allocation8 + $0xa4] sm:$0xf0]  ;;  %v804_v29 = vld [vmem:[#allocation8 + $0x28] sm:$0xf0]  ;;  %v1068_v32 = vld [vmem:[#allocation8 + $0xa4] sm:$0xf] }
  0x2c   :  { %v867_v30 = vor.u32 %v1069_v27, %v866_v25  ;;  %v807_v31 = vor.u32 %v1052_v28, %v804_v29  ;;  %v868_v33 = vld [vmem:[#allocation8 + $0xa8] sm:$0xf0]  ;;  %v794_v35 = vld [vmem:[#allocation8 + $0x10] sm:$0xf]  ;;  %v1051_v36 = vld [vmem:[#allocation8 + $0x14] sm:$0xf0] }
  0x2d   :  { %430 = vmatpush.bf16.msrb.mxu0 %v839_v59  ;;  %v871_v34 = vor.u32 %v1068_v32, %v868_v33  ;;  %v858_v37 = vld [vmem:[#allocation8 + $0x90] sm:$0xf]  ;;  %v795_v38 = vor.u32 %v1051_v36, %v794_v35  ;;  %v1067_v39 = vld [vmem:[#allocation8 + $0x94] sm:$0xf0]  ;;  %v1050_v40 = vld [vmem:[#allocation8 + $0x14] sm:$0xf] }
  0x2e   :  { %444 = vmatpush.bf16.msrb.mxu1 %v903_v60  ;;  %405 = vmatpush.bf16.msra.mxu2 %v811_v13  ;;  %v796_v41 = vld [vmem:[#allocation8 + $0x18] sm:$0xf0]  ;;  %v859_v42 = vor.u32 %v1067_v39, %v858_v37  ;;  %v1066_v44 = vld [vmem:[#allocation8 + $0x94] sm:$0xf]  ;;  %v786_v47 = vld [vmem:[#allocation8] sm:$0xf] }
  0x2f   :  { %419 = vmatpush.bf16.msra.mxu3 %v875_v17  ;;  %v799_v43 = vor.u32 %v1050_v40, %v796_v41  ;;  %v860_v45 = vld [vmem:[#allocation8 + $0x98] sm:$0xf0]  ;;  %v1049_v48 = vld [vmem:[#allocation8 + $0x4] sm:$0xf0]  ;;  %v850_v49 = vld [vmem:[#allocation8 + $0x80] sm:$0xf] }
  0x30   :  { %v863_v46 = vor.u32 %v1066_v44, %v860_v45  ;;  %v787_v50 = vor.u32 %v1049_v48, %v786_v47  ;;  %v1065_v51 = vld [vmem:[#allocation8 + $0x84] sm:$0xf0]  ;;  %v1048_v52 = vld [vmem:[#allocation8 + $0x4] sm:$0xf]  ;;  %v788_v53 = vld [vmem:[#allocation8 + $0x8] sm:$0xf0] }
  0x31   :  { %431 = vmatpush.bf16.msrb.mxu0 %v831_v3  ;;  %v851_v54 = vor.u32 %v1065_v51, %v850_v49  ;;  %v791_v55 = vor.u32 %v1048_v52, %v788_v53  ;;  %v1064_v56 = vld [vmem:[#allocation8 + $0x84] sm:$0xf]  ;;  %v852_v57 = vld [vmem:[#allocation8 + $0x88] sm:$0xf0]  ;;  %v1034_v59 = vld [vmem:[#allocation10 + $0xf0] sm:$0xf] }
  0x32   :  { %445 = vmatpush.bf16.msrb.mxu1 %v895_v4  ;;  %406 = vmatpush.bf16.msra.mxu2 %v803_v26  ;;  %v855_v58 = vor.u32 %v1064_v56, %v852_v57  ;;  %v1111_v60 = vld [vmem:[#allocation10 + $0xf4] sm:$0xf0]  ;;  %v1110_v61 = vld [vmem:[#allocation10 + $0xf4] sm:$0xf]  ;;  %v1036_v63 = vld [vmem:[#allocation10 + $0xf8] sm:$0xf0] }
  0x33   :  { %420 = vmatpush.bf16.msra.mxu3 %v867_v30  ;;  %v1035_v62 = vor.u32 %v1111_v60, %v1034_v59  ;;  %v1026_v0 = vld [vmem:[#allocation10 + $0xe0] sm:$0xf]  ;;  %v1109_v1 = vld [vmem:[#allocation10 + $0xe4] sm:$0xf0]  ;;  %v1039_v2 = vor.u32 %v1110_v61, %v1036_v63  ;;  %v1108_v3 = vld [vmem:[#allocation10 + $0xe4] sm:$0xf] }
  0x34   :  { %v1028_v4 = vld [vmem:[#allocation10 + $0xe8] sm:$0xf0]  ;;  %v970_v5 = vld [vmem:[#allocation10 + $0x70] sm:$0xf]  ;;  %v1027_v6 = vor.u32 %v1109_v1, %v1026_v0  ;;  %v1095_v7 = vld [vmem:[#allocation10 + $0x74] sm:$0xf0] }
  0x35   :  { %432 = vmatpush.bf16.msrb.mxu0 %v823_v9  ;;  %v1094_v8 = vld [vmem:[#allocation10 + $0x74] sm:$0xf]  ;;  %v972_v9 = vld [vmem:[#allocation10 + $0x78] sm:$0xf0]  ;;  %v971_v11 = vor.u32 %v1095_v7, %v970_v5  ;;  %v1018_v13 = vld [vmem:[#allocation10 + $0xd0] sm:$0xf] }
  0x36   :  { %446 = vmatpush.bf16.msrb.mxu1 %v887_v10  ;;  %407 = vmatpush.bf16.msra.mxu2 %v795_v38  ;;  %v1031_v10 = vor.u32 %v1108_v3, %v1028_v4  ;;  %v975_v12 = vor.u32 %v1094_v8, %v972_v9  ;;  %v1107_v14 = vld [vmem:[#allocation10 + $0xd4] sm:$0xf0]  ;;  %v1106_v15 = vld [vmem:[#allocation10 + $0xd4] sm:$0xf]  ;;  %v1020_v16 = vld [vmem:[#allocation10 + $0xd8] sm:$0xf0] }
  0x37   :  { %421 = vmatpush.bf16.msra.mxu3 %v859_v42  ;;  %v962_v17 = vld [vmem:[#allocation10 + $0x60] sm:$0xf]  ;;  %v1093_v18 = vld [vmem:[#allocation10 + $0x64] sm:$0xf0]  ;;  %v1092_v20 = vld [vmem:[#allocation10 + $0x64] sm:$0xf]  ;;  %v1023_v24 = vor.u32 %v1106_v15, %v1020_v16 }
  0x38   :  { %v963_v19 = vor.u32 %v1093_v18, %v962_v17  ;;  %v115_v25 = vld [vmem:[#allocation7] sm:$0x3]  ;;  %v1105_v47 = vld [vmem:[#allocation10 + $0xc4] sm:$0xf0]  ;;  %v1104_v48 = vld [vmem:[#allocation10 + $0xc4] sm:$0xf] }
  0x39   :  { %433 = vmatpush.bf16.msrb.mxu0 %v815_v21  ;;  %v964_v21 = vld [vmem:[#allocation10 + $0x68] sm:$0xf0]  ;;  %v117_v27 = vperm.slane %v115_v25, 0  ;;  %v118_v29 = vperm.slane %v115_v25, 1  ;;  %v954_v52 = vld [vmem:[#allocation10 + $0x50] sm:$0xf] }
  0x3a   :  { %447 = vmatpush.bf16.msrb.mxu1 %v879_v22  ;;  %408 = vmatpush.bf16.msra.mxu2 %v787_v50  ;;  %v1019_v22 = vor.u32 %v1107_v14, %v1018_v13  ;;  %v967_v23 = vor.u32 %v1092_v20, %v964_v21  ;;  %v1012_v50 = vld [vmem:[#allocation10 + $0xc8] sm:$0xf0]  ;;  %v1091_v53 = vld [vmem:[#allocation10 + $0x54] sm:$0xf0]  ;;  %v956_v56 = vld [vmem:[#allocation10 + $0x58] sm:$0xf0] }
  0x3b   :  { %422 = vmatpush.bf16.msra.mxu3 %v851_v54  ;;  %v1015_v51 = vor.u32 %v1104_v48, %v1012_v50  ;;  %v1090_v54 = vld [vmem:[#allocation10 + $0x54] sm:$0xf]  ;;  %v1103_v59 = vld [vmem:[#allocation10 + $0xb4] sm:$0xf0]  ;;  %v946_v0 = vld [vmem:[#allocation10 + $0x40] sm:$0xf] }
  0x3c   :  { %v959_v57 = vor.u32 %v1090_v54, %v956_v56  ;;  %v1102_v60 = vld [vmem:[#allocation10 + $0xb4] sm:$0xf]  ;;  %v1089_v1 = vld [vmem:[#allocation10 + $0x44] sm:$0xf0]  ;;  %v948_v4 = vld [vmem:[#allocation10 + $0x48] sm:$0xf0] }
  0x3d   :  { %434 = vmatpush.bf16.msrb.mxu0 %v807_v31  ;;  %v947_v3 = vor.u32 %v1089_v1, %v946_v0  ;;  %v1101_v7 = vld [vmem:[#allocation10 + $0xa4] sm:$0xf0]  ;;  %v1100_v9 = vld [vmem:[#allocation10 + $0xa4] sm:$0xf]  ;;  %v1087_v13 = vld [vmem:[#allocation10 + $0x34] sm:$0xf0] }
  0x3e   :  { %448 = vmatpush.bf16.msrb.mxu1 %v871_v34  ;;  %665 = vmatpush.bf16.msrb.mxu2 %v971_v11  ;;  %v1086_v14 = vld [vmem:[#allocation10 + $0x34] sm:$0xf]  ;;  %v940_v16 = vld [vmem:[#allocation10 + $0x38] sm:$0xf0]  ;;  %v986_v18 = vld [vmem:[#allocation10 + $0x90] sm:$0xf] }
  0x3f   :  { %679 = vmatpush.bf16.msrb.mxu3 %v1035_v62  ;;  %v1004_v62 = vld [vmem:[#allocation10 + $0xb8] sm:$0xf0]  ;;  %v943_v17 = vor.u32 %v1086_v14, %v940_v16  ;;  %v1098_v20 = vld [vmem:[#allocation10 + $0x94] sm:$0xf]  ;;  %v1085_v25 = vld [vmem:[#allocation10 + $0x24] sm:$0xf0] }
  0x40   :  { %v1007_v63 = vor.u32 %v1102_v60, %v1004_v62  ;;  %v235_v48 = vld [vmem:[%s1373_s4] sm:$0x3] }
  0x41   :  { %435 = vmatpush.bf16.msrb.mxu0 %v799_v43 }
  0x42   :  { %449 = vmatpush.bf16.msrb.mxu1 %v863_v46  ;;  %666 = vmatpush.bf16.msrb.mxu2 %v963_v19  ;;  %v1010_v46 = vld [vmem:[#allocation10 + $0xc0] sm:$0xf]  ;;  %v1099_v19 = vld [vmem:[#allocation10 + $0x94] sm:$0xf0] }
  0x43   :  { %680 = vmatpush.bf16.msrb.mxu3 %v1027_v6  ;;  %v1011_v49 = vor.u32 %v1105_v47, %v1010_v46  ;;  %v994_v6 = vld [vmem:[#allocation10 + $0xa0] sm:$0xf]  ;;  %v987_v21 = vor.u32 %v1099_v19, %v986_v18  ;;  %v916_v46 = vld [vmem:[#allocation10 + $0x8] sm:$0xf0] }
  0x44   :  { %v995_v8 = vor.u32 %v1101_v7, %v994_v6 }
  0x45   :  { %436 = vmatpush.bf16.msrb.mxu0 %v791_v55  ;;  %v955_v55 = vor.u32 %v1091_v53, %v954_v52  ;;  %v237_v53 = vperm.slane %v235_v48, 0 }
  0x46   :  { %450 = vmatpush.bf16.msrb.mxu1 %v855_v58  ;;  %v1002_v58 = vld [vmem:[#allocation10 + $0xb0] sm:$0xf] }
  0x47   :  { %681 = vmatpush.bf16.msrb.mxu3 %v1019_v22  ;;  %667 = vmatpush.bf16.msrb.mxu2 %v955_v55  ;;  %v1003_v61 = vor.u32 %v1103_v59, %v1002_v58  ;;  %v988_v22 = vld [vmem:[#allocation10 + $0x98] sm:$0xf0] }
  0x49   :  { %693 = vmatpush.bf16.msra.mxu0 %v975_v12  ;;  %v938_v12 = vld [vmem:[#allocation10 + $0x30] sm:$0xf] }
  0x4a   :  { %707 = vmatpush.bf16.msra.mxu1 %v1039_v2  ;;  %v1088_v2 = vld [vmem:[#allocation10 + $0x44] sm:$0xf]  ;;  %v939_v15 = vor.u32 %v1087_v13, %v938_v12  ;;  %v499_v13 = vld [vmem:[%s1375_s6] sm:$0x3]  ;;  %s1287_s6 = smov [#allocation11]  }
  0x4b   :  { %682 = vmatpush.bf16.msrb.mxu3 %v1011_v49  ;;  %v951_v5 = vor.u32 %v1088_v2, %v948_v4  ;;  %668 = vmatpush.bf16.msrb.mxu2 %v947_v3  ;;  %v238_v49 = vperm.slane %v235_v48, 1  ;;  %v502_v14 = vperm.slane %v499_v13, 1  ;;  %v501_v18 = vperm.slane %v499_v13, 0  ;;  %s733_s26 = sshll.u32 %s1287_s6, 4  ;;  %s734_s26 = int_to_ptr.vmem [resolvable:$true] %s733_s26 }
  0x4d   :  { %694 = vmatpush.bf16.msra.mxu0 %v967_v23  ;;  %v991_v23 = vor.u32 %v1098_v20, %v988_v22 }
  0x4e   :  { %708 = vmatpush.bf16.msra.mxu1 %v1031_v10  ;;  %v996_v10 = vld [vmem:[#allocation10 + $0xa8] sm:$0xf0] }
  0x4f   :  { %683 = vmatpush.bf16.msrb.mxu3 %v1003_v61  ;;  %v999_v11 = vor.u32 %v1100_v9, %v996_v10  ;;  %669 = vmatpush.bf16.msrb.mxu2 %v939_v15 }
  0x51   :  { %695 = vmatpush.bf16.msra.mxu0 %v959_v57 }
  0x52   :  { %709 = vmatpush.bf16.msra.mxu1 %v1023_v24  ;;  %v930_v24 = vld [vmem:[#allocation10 + $0x20] sm:$0xf] }
  0x53   :  { %684 = vmatpush.bf16.msrb.mxu3 %v995_v8 }
  0x55   :  { %696 = vmatpush.bf16.msra.mxu0 %v951_v5 }
  0x56   :  { %710 = vmatpush.bf16.msra.mxu1 %v1015_v51 }
  0x57   :  { %685 = vmatpush.bf16.msrb.mxu3 %v987_v21 }
  0x59   :  { %697 = vmatpush.bf16.msra.mxu0 %v943_v17 }
  0x5a   :  { %711 = vmatpush.bf16.msra.mxu1 %v1007_v63 }
  0x5e   :  { %712 = vmatpush.bf16.msra.mxu1 %v999_v11 }
  0x62   :  { %713 = vmatpush.bf16.msra.mxu1 %v991_v23 }
  0xa5   :  { %v174_v26 = vpop.f32.mrf.mxu0 }
  0xa6   :  { %v188_v28 = vpop.f32.mrf.mxu1  ;;  %v175_v30 = vadd.f32 %v174_v26, %v117_v27  ;;  %v1084_v26 = vld [vmem:[#allocation10 + $0x24] sm:$0xf] }
  0xa7   :  { %v189_v31 = vadd.f32 %v188_v28, %v118_v29  ;;  %v932_v28 = vld [vmem:[#allocation10 + $0x28] sm:$0xf0] }
  0xa8   :  { %v193_v33 = vmul.f32 0.1, %v175_v30 }
  0xa9   :  { %v194_v36 = vmul.f32 0.1, %v189_v31 }
  0xaa   :  { %v197_v40 = vmax.f32 %v175_v30, %v193_v33  ;;  %v978_v30 = vld [vmem:[#allocation10 + $0x80] sm:$0xf] }
  0xab   :  { %v198_v42 = vmax.f32 %v189_v31, %v194_v36  ;;  %v1097_v31 = vld [vmem:[#allocation10 + $0x84] sm:$0xf0]  ;;  %v922_v36 = vld [vmem:[#allocation10 + $0x10] sm:$0xf] }
  0xac   :  { %v979_v33 = vor.u32 %v1097_v31, %v978_v30 }
  0xad   :  { %v176_v32 = vpop.f32.mrf.mxu0 }
  0xae   :  { %v177_v34 = vadd.f32 %v176_v32, %v117_v27  ;;  %v190_v35 = vpop.f32.mrf.mxu1  ;;  %v931_v27 = vor.u32 %v1085_v25, %v930_v24  ;;  %v1096_v32 = vld [vmem:[#allocation10 + $0x84] sm:$0xf]  ;;  %686 = vmatpush.bf16.msrb.mxu3 %v979_v33 }
  0xaf   :  { %v191_v37 = vadd.f32 %v190_v35, %v118_v29  ;;  %v935_v29 = vor.u32 %v1084_v26, %v932_v28 }
  0xb0   :  { %v195_v38 = vmul.f32 0.1, %v177_v34  ;;  %670 = vmatpush.bf16.msrb.mxu2 %v931_v27 }
  0xb1   :  { %v196_v39 = vmul.f32 0.1, %v191_v37  ;;  %698 = vmatpush.bf16.msra.mxu0 %v935_v29 }
  0xb2   :  { %v199_v41 = vmax.f32 %v177_v34, %v195_v38  ;;  %v980_v34 = vld [vmem:[#allocation10 + $0x88] sm:$0xf0]  ;;  %v1082_v38 = vld [vmem:[#allocation10 + $0x14] sm:$0xf] }
  0xb3   :  { %v200_v43 = vmax.f32 %v191_v37, %v196_v39  ;;  %v983_v35 = vor.u32 %v1096_v32, %v980_v34  ;;  %v1083_v37 = vld [vmem:[#allocation10 + $0x14] sm:$0xf0] }
  0xb4   :  { %v201_v44 = vpack.c.bf16 %v199_v41, %v197_v40  ;;  %v923_v39 = vor.u32 %v1083_v37, %v922_v36  ;;  %v924_v40 = vld [vmem:[#allocation10 + $0x18] sm:$0xf0] }
  0xb5   :  { %v202_v45 = vpack.c.bf16 %v200_v43, %v198_v42  ;;  %714 = vmatpush.bf16.msra.mxu1 %v983_v35  ;;  %v927_v41 = vor.u32 %v1082_v38, %v924_v40  ;;  %v914_v42 = vld [vmem:[#allocation10] sm:$0xf]  ;;  %v1081_v43 = vld [vmem:[#allocation10 + $0x4] sm:$0xf0] }
  0xb6   :  { %409 = vmatmul.bf16.vlgmr.msra.gmra.mxu2 %v201_v44  ;;  %437 = vmatmul.bf16.vlgmr.msrb.gmra.mxu0 %v201_v44  ;;  %v1080_v44 = vld [vmem:[#allocation10 + $0x4] sm:$0xf] }
  0xb7   :  { %423 = vmatmul.bf16.vlgmr.msra.gmra.mxu3 %v202_v45  ;;  %451 = vmatmul.bf16.vlgmr.msrb.gmra.mxu1 %v202_v45  ;;  %v915_v45 = vor.u32 %v1081_v43, %v914_v42  ;;  %v919_v47 = vor.u32 %v1080_v44, %v916_v46 }
  0xb8   :  { %671 = vmatpush.bf16.msrb.mxu2 %v923_v39  ;;  %699 = vmatpush.bf16.msra.mxu0 %v927_v41 }
  0xbc   :  { %672 = vmatpush.bf16.msrb.mxu2 %v915_v45  ;;  %700 = vmatpush.bf16.msra.mxu0 %v919_v47 }
 0x133   :  { %v438_v50 = vpop.f32.mrf.mxu0 }
 0x134   :  { %v452_v51 = vpop.f32.mrf.mxu1  ;;  %v439_v52 = vadd.f32 %v438_v50, %v238_v49 }
 0x136   :  { %v453_v55 = vadd.f32 %v452_v51, %v439_v52 }
 0x138   :  { %v458_v61 = vmul.f32 0.1, %v453_v55 }
 0x139   :  { %v410_v54 = vpop.f32.mrf.mxu2 }
 0x13a   :  { %v424_v56 = vpop.f32.mrf.mxu3  ;;  %v411_v58 = vadd.f32 %v410_v54, %v237_v53  ;;  %v462_v2 = vmax.f32 %v453_v55, %v458_v61 }
 0x13b   :  { %v440_v57 = vpop.f32.mrf.mxu0 }
 0x13c   :  { %v441_v59 = vadd.f32 %v440_v57, %v238_v49  ;;  %v454_v60 = vpop.f32.mrf.mxu1  ;;  %v425_v63 = vadd.f32 %v424_v56, %v411_v58 }
 0x13e   :  { %v455_v62 = vadd.f32 %v454_v60, %v441_v59  ;;  %v457_v6 = vmul.f32 0.1, %v425_v63 }
 0x140   :  { %v460_v0 = vmul.f32 0.1, %v455_v62  ;;  %v461_v10 = vmax.f32 %v425_v63, %v457_v6 }
 0x141   :  { %v412_v1 = vpop.f32.mrf.mxu2 }
 0x142   :  { %v464_v3 = vmax.f32 %v455_v62, %v460_v0  ;;  %v413_v4 = vadd.f32 %v412_v1, %v237_v53  ;;  %v426_v5 = vpop.f32.mrf.mxu3 }
 0x144   :  { %v427_v7 = vadd.f32 %v426_v5, %v413_v4  ;;  %v466_v8 = vpack.c.bf16 %v464_v3, %v462_v2 }
 0x146   :  { %v459_v9 = vmul.f32 0.1, %v427_v7  ;;  %687 = vmatmul.bf16.vlgmr.msrb.gmra.mxu3 %v466_v8  ;;  %715 = vmatmul.bf16.vlgmr.msra.gmra.mxu1 %v466_v8 }
 0x148   :  { %v463_v11 = vmax.f32 %v427_v7, %v459_v9 }
 0x14a   :  { %v465_v12 = vpack.c.bf16 %v463_v11, %v461_v10 }
 0x14c   :  { %673 = vmatmul.bf16.vlgmr.msrb.gmra.mxu2 %v465_v12  ;;  %701 = vmatmul.bf16.vlgmr.msra.gmra.mxu0 %v465_v12 }
 0x1c3   :  { %v716_v17 = vpop.f32.mrf.mxu1 }
 0x1c9   :  { %v702_v15 = vpop.f32.mrf.mxu0  ;;  %v688_v19 = vpop.f32.mrf.mxu3 }
 0x1ca   :  { %v703_v16 = vadd.f32 %v702_v15, %v502_v14 }
 0x1cb   :  { %v718_v26 = vpop.f32.mrf.mxu1 }
 0x1cc   :  { %v717_v20 = vadd.f32 %v716_v17, %v703_v16 }
 0x1ce   :  { %1120 = vtanh.f32 %v717_v20 }
 0x1cf   :  { %v674_v21 = vpop.f32.mrf.mxu2 }
 0x1d0   :  { %v675_v22 = vadd.f32 %v674_v21, %v501_v18 }
 0x1d1   :  { %v704_v23 = vpop.f32.mrf.mxu0  ;;  %v690_v31 = vpop.f32.mrf.mxu3 }
 0x1d2   :  { %v689_v24 = vadd.f32 %v688_v19, %v675_v22  ;;  %v705_v25 = vadd.f32 %v704_v23, %v502_v14 }
 0x1d4   :  { %1122 = vtanh.f32 %v689_v24  ;;  %v719_v27 = vadd.f32 %v718_v26, %v705_v25  ;;  %v1121_v30 = vpop.eup %1120 }
 0x1d6   :  { %1124 = vtanh.f32 %v719_v27 }
 0x1d7   :  { %v676_v28 = vpop.f32.mrf.mxu2 }
 0x1d8   :  { %v677_v29 = vadd.f32 %v676_v28, %v501_v18 }
 0x1da   :  { %v1123_v32 = vpop.eup %1122  ;;  %v691_v33 = vadd.f32 %v690_v31, %v677_v29 }
 0x1db   :  { %v725_v34 = vpack.c.bf16 %v1121_v30, %v1123_v32 }
 0x1dc   :  { %1126 = vtanh.f32 %v691_v33  ;;  %v1125_v35 = vpop.eup %1124 }
 0x1dd   :  { %727 = vst [vmem:[#allocation11] sm:$0xff] %v725_v34 }
 0x1e2   :  { %v1127_v36 = vpop.eup %1126 }
 0x1e3   :  { %v726_v37 = vpack.c.bf16 %v1125_v35, %v1127_v36 }
 0x1e5   :  { %728 = vst [vmem:[#allocation11 + $0x8] sm:$0xff] %v726_v37 }
 0x1e6   :  { %741 = dma.vmem_to_hbm [thread:$0]  %s734_s26, 256, %s736_s29, [#allocation4], %s1281_s9, %s1281_s9, %s1282_s10  }
 0x1e7   :  { %1278 = dma.done.wait [#allocation4], 256  }
 0x1e8   :  { %1279 = vsyncadd [#allocation4], 4294967040 }
 0x1e9   :  { %746 = vsyncpa [#allocation3], 1 }
 0x1ea   :  { %747 = vsyncpa [#allocation6], 1 }
 0x1eb   :  { %748 = vsyncpa [#allocation9], 1 }
 0x1ec   :  { %749 = vsyncpa [#allocation4], 1 }

</bundles_post_ra>
